<compile_context>
chip_gen: v7x
topology: tpu7x:2x2x1
jax: 0.10.0
libtpu: 0.0.40
codegen_flags: <defaults>
</compile_context>

<pallas_src>
import jax
import jax.numpy as jnp
from jax.experimental import pallas as pl
from jax.experimental.pallas import tpu as pltpu


# ----------------------------- fused FFN kernel -------------------------------

_SQRT_2_OVER_PI = 0.7978845608028654

_V7X_VMEM_BYTES = 64 * 2**20        # smallest physical VMEM among v5e/v6e/v7x
_VMEM_BUDGET = 48 * 2**20           # leave headroom under the v7x ceiling


def _gelu_tanh(x):
    # x * 0.5 * (1 + tanh(sqrt(2/pi) * (x + 0.044715 x^3))), folded as x*(1 + c*x^2)
    # to trim VALU ops on the (tm, H) hidden tile (largest vreg-pressure object).
    x2 = x * x
    return 0.5 * x * (1.0 + jnp.tanh(_SQRT_2_OVER_PI * x * (1.0 + 0.044715 * x2)))


def _ffn_kernel(x_ref, w1_ref, b1_ref, w2_ref, b2_ref, o_ref):
    # x_ref: (tm, D) f32 tile; w1_ref/w2_ref: resident bf16 weights; biases f32.
    x = x_ref[...]
    # bf16 MXU operands, f32 accumulation (MXU is bf16-native on v5e/v6e/v7x).
    h = jnp.dot(x.astype(jnp.bfloat16), w1_ref[...],
                preferred_element_type=jnp.float32) + b1_ref[...]
    g = _gelu_tanh(h)                                    # f32 elementwise (v5e-safe)
    y = jnp.dot(g.astype(jnp.bfloat16), w2_ref[...],
                preferred_element_type=jnp.float32) + b2_ref[...]
    o_ref[...] = y.astype(o_ref.dtype)


# ----------------------------- tiling / VMEM policy ----------------------------

def _pick_row_tile(M, block_m):
    """Multiple-of-8 row tile, <= block_m, with >= 2 grid steps whenever M allows."""
    if M <= 8:
        return max(M, 1)
    tm = min(block_m, M)
    tm = max(8, (tm // 8) * 8)
    if pl.cdiv(M, tm) < 2:
        # Split the work so both TensorCores on v7x get a tile.
        tm = max(8, ((pl.cdiv(M, 2) + 7) // 8) * 8)
    return tm


def _vmem_estimate_bytes(tm, D, H):
    f32, bf16 = 4, 2
    acts = 2 * tm * D * f32 * 2                 # input + output tiles, double-buffered
    weights = 2 * (D * H + H * D) * bf16        # resident bf16 weights, double-buffered
    biases = 2 * (H + D) * f32
    hidden = 2 * tm * H * f32                   # hidden activation + GELU temporaries
    return acts + weights + biases + hidden


# ----------------------------- wrapper ------------------------------------------

def feed_forward(x, w1, b1, w2, b2, *, block_m=512):
    """x: (..., D); w1: (D, H); b1: (H,); w2: (H, D); b2: (D,). Returns x.shape."""
    orig_shape = x.shape
    D = orig_shape[-1]
    H = w1.shape[1]
    x2 = x.reshape(-1, D)
    M = x2.shape[0]

    tm = _pick_row_tile(M, block_m)
    # Auto-shrink the row tile if the VMEM estimate would blow the v7x budget.
    while _vmem_estimate_bytes(tm, D, H) > _VMEM_BUDGET and tm > 8:
        tm = max(8, ((tm // 2) // 8) * 8)

    # Pad rows so the grid tiles M exactly — never fall back to a single full-M tile.
    m_pad = pl.cdiv(M, tm) * tm
    if m_pad != M:
        x2 = jnp.pad(x2, ((0, m_pad - M), (0, 0)))
    grid = (m_pad // tm,)

    est = _vmem_estimate_bytes(tm, D, H)
    assert est <= _VMEM_BUDGET, "row tile too large for v7x VMEM budget"
    vmem_limit = int(min(_V7X_VMEM_BYTES, max(32 * 2**20, 2 * est)))

    # Weights handed to the kernel in bf16 (halves resident weight bytes + DMA).
    w1_bf = w1.astype(jnp.bfloat16)
    w2_bf = w2.astype(jnp.bfloat16)
    b1_2d = b1.reshape(1, H).astype(jnp.float32)
    b2_2d = b2.reshape(1, D).astype(jnp.float32)

    out = pl.pallas_call(
        _ffn_kernel,
        grid=grid,
        out_shape=jax.ShapeDtypeStruct((m_pad, D), x.dtype),
        in_specs=[
            pl.BlockSpec((tm, D), lambda i: (i, 0)),   # activations: tiled over rows
            pl.BlockSpec((D, H), lambda i: (0, 0)),    # W1 (bf16): resident across steps
            pl.BlockSpec((1, H), lambda i: (0, 0)),    # b1
            pl.BlockSpec((H, D), lambda i: (0, 0)),    # W2 (bf16): resident across steps
            pl.BlockSpec((1, D), lambda i: (0, 0)),    # b2
        ],
        out_specs=pl.BlockSpec((tm, D), lambda i: (i, 0)),
        compiler_params=pltpu.CompilerParams(
            dimension_semantics=("parallel",),          # megacore sharding on v7x
            vmem_limit_bytes=vmem_limit,
        ),
    )(x2, w1_bf, b1_2d, w2_bf, b2_2d)

    return out[:M].reshape(orig_shape)


# ----------------------------- pure-JAX reference ------------------------------

def reference_forward(x, w1, b1, w2, b2):
    h = x @ w1 + b1
    g = _gelu_tanh(h)
    return g @ w2 + b2


# ----------------------------- main --------------------------------------------

if __name__ == "__main__":
    # Small shapes consistent with the module; dim/hidden lane-dense (multiples of 128).
    B, N = 2, 16
    dim, hidden_dim = 128, 256

    key = jax.random.PRNGKey(0)
    ks = jax.random.split(key, 5)
    x = jax.random.normal(ks[0], (B, N, dim), jnp.float32)

    w1 = jax.random.normal(ks[1], (dim, hidden_dim), jnp.float32) / jnp.sqrt(float(dim))
    b1 = 0.1 * jax.random.normal(ks[2], (hidden_dim,), jnp.float32)
    w2 = jax.random.normal(ks[3], (hidden_dim, dim), jnp.float32) / jnp.sqrt(float(hidden_dim))
    b2 = 0.1 * jax.random.normal(ks[4], (dim,), jnp.float32)

    out = feed_forward(x, w1, b1, w2, b2)
    jax.block_until_ready(out)

    ref = reference_forward(x, w1, b1, w2, b2)
    assert out.shape == (B, N, dim)
    # Tolerance loosened vs. pure-f32 because the MXU operands are bf16 (f32 accum).
    assert jnp.allclose(out, ref, atol=5e-2, rtol=5e-2), \
        float(jnp.max(jnp.abs(out - ref)))

    print("KERNEL_OK")
</pallas_src>

<mosaic_0001>
module attributes {stable_mosaic.version = 11 : i64} {
  func.func @_ffn_kernel(%arg0: i32, %arg1: memref<16x128xf32, #tpu.memory_space<vmem>>, %arg2: memref<128x256xbf16, #tpu.memory_space<vmem>>, %arg3: memref<1x256xf32, #tpu.memory_space<vmem>>, %arg4: memref<256x128xbf16, #tpu.memory_space<vmem>>, %arg5: memref<1x128xf32, #tpu.memory_space<vmem>>, %arg6: memref<16x128xf32, #tpu.memory_space<vmem>>) attributes {dimension_semantics = [#tpu.dimension_semantics<parallel>], iteration_bounds = array<i64: 2>, scalar_prefetch = 0 : i64, scratch_operands = 0 : i64, tpu.core_type = #tpu.core_type<tc>, window_params = [{transform_indices = @transform_0, window_bounds = array<i64: 16, 128>}, {pipeline_mode = #tpu.pipeline_mode<synchronous>, transform_indices = @transform_1, window_bounds = array<i64: 128, 256>}, {pipeline_mode = #tpu.pipeline_mode<synchronous>, transform_indices = @transform_2, window_bounds = array<i64: 1, 256>}, {pipeline_mode = #tpu.pipeline_mode<synchronous>, transform_indices = @transform_3, window_bounds = array<i64: 256, 128>}, {pipeline_mode = #tpu.pipeline_mode<synchronous>, transform_indices = @transform_4, window_bounds = array<i64: 1, 128>}, {transform_indices = @transform_5, window_bounds = array<i64: 16, 128>}]} {
    %c0 = arith.constant 0 : index
    %c0_0 = arith.constant 0 : index
    %0 = vector.load %arg1[%c0, %c0_0] : memref<16x128xf32, #tpu.memory_space<vmem>>, vector<16x128xf32>
    %1 = arith.truncf %0 : vector<16x128xf32> to vector<16x128xbf16>
    %c0_1 = arith.constant 0 : index
    %c0_2 = arith.constant 0 : index
    %2 = vector.load %arg2[%c0_1, %c0_2] : memref<128x256xbf16, #tpu.memory_space<vmem>>, vector<128x256xbf16>
    %cst = arith.constant dense<0.000000e+00> : vector<16x256xf32>
    %3 = tpu.matmul %1, %2, %cst {dimension_numbers = #tpu.dot_dimension_numbers<[1], [0], [0], [1], [0, 0, 1, 1], [], []>} : vector<16x128xbf16>, vector<128x256xbf16>, vector<16x256xf32> -> vector<16x256xf32>
    %c0_3 = arith.constant 0 : index
    %c0_4 = arith.constant 0 : index
    %4 = vector.load %arg3[%c0_3, %c0_4] : memref<1x256xf32, #tpu.memory_space<vmem>>, vector<1x256xf32>
    %5 = vector.broadcast %4 : vector<1x256xf32> to vector<16x256xf32>
    %6 = arith.addf %3, %5 : vector<16x256xf32>
    %7 = arith.mulf %6, %6 : vector<16x256xf32>
    %cst_5 = arith.constant 5.000000e-01 : f32
    %8 = vector.broadcast %cst_5 : f32 to vector<16x256xf32>
    %9 = arith.mulf %8, %6 : vector<16x256xf32>
    %cst_6 = arith.constant 0.797884583 : f32
    %10 = vector.broadcast %cst_6 : f32 to vector<16x256xf32>
    %11 = arith.mulf %10, %6 : vector<16x256xf32>
    %cst_7 = arith.constant 4.471500e-02 : f32
    %12 = vector.broadcast %cst_7 : f32 to vector<16x256xf32>
    %13 = arith.mulf %12, %7 : vector<16x256xf32>
    %cst_8 = arith.constant 1.000000e+00 : f32
    %14 = vector.broadcast %cst_8 : f32 to vector<16x256xf32>
    %15 = arith.addf %14, %13 : vector<16x256xf32>
    %16 = arith.mulf %11, %15 : vector<16x256xf32>
    %17 = math.tanh %16 : vector<16x256xf32>
    %cst_9 = arith.constant 1.000000e+00 : f32
    %18 = vector.broadcast %cst_9 : f32 to vector<16x256xf32>
    %19 = arith.addf %18, %17 : vector<16x256xf32>
    %20 = arith.mulf %9, %19 : vector<16x256xf32>
    %21 = arith.truncf %20 : vector<16x256xf32> to vector<16x256xbf16>
    %c0_10 = arith.constant 0 : index
    %c0_11 = arith.constant 0 : index
    %22 = vector.load %arg4[%c0_10, %c0_11] : memref<256x128xbf16, #tpu.memory_space<vmem>>, vector<256x128xbf16>
    %cst_12 = arith.constant dense<0.000000e+00> : vector<16x128xf32>
    %23 = tpu.matmul %21, %22, %cst_12 {dimension_numbers = #tpu.dot_dimension_numbers<[1], [0], [0], [1], [0, 0, 1, 1], [], []>} : vector<16x256xbf16>, vector<256x128xbf16>, vector<16x128xf32> -> vector<16x128xf32>
    %c0_13 = arith.constant 0 : index
    %c0_14 = arith.constant 0 : index
    %24 = vector.load %arg5[%c0_13, %c0_14] : memref<1x128xf32, #tpu.memory_space<vmem>>, vector<1x128xf32>
    %25 = vector.broadcast %24 : vector<1x128xf32> to vector<16x128xf32>
    %26 = arith.addf %23, %25 : vector<16x128xf32>
    %c0_15 = arith.constant 0 : index
    %c0_16 = arith.constant 0 : index
    %27 = vector.load %arg6[%c0_15, %c0_16] : memref<16x128xf32, #tpu.memory_space<vmem>>, vector<16x128xf32>
    tpu.vector_store %arg6[%c0_15, %c0_16], %26 {strides = array<i32>} : memref<16x128xf32, #tpu.memory_space<vmem>>, vector<16x128xf32>,
    return
  }
  func.func @transform_0(%arg0: i32) -> (i32, i32) {
    %c0_i32 = arith.constant 0 : i32
    %c0_i32_0 = arith.constant 0 : i32
    return %arg0, %c0_i32 : i32, i32
  }
  func.func @transform_1(%arg0: i32) -> (i32, i32) {
    %c0_i32 = arith.constant 0 : i32
    %c0_i32_0 = arith.constant 0 : i32
    %c0_i32_1 = arith.constant 0 : i32
    return %c0_i32, %c0_i32_0 : i32, i32
  }
  func.func @transform_2(%arg0: i32) -> (i32, i32) {
    %c0_i32 = arith.constant 0 : i32
    %c0_i32_0 = arith.constant 0 : i32
    %c0_i32_1 = arith.constant 0 : i32
    return %c0_i32, %c0_i32_0 : i32, i32
  }
  func.func @transform_3(%arg0: i32) -> (i32, i32) {
    %c0_i32 = arith.constant 0 : i32
    %c0_i32_0 = arith.constant 0 : i32
    %c0_i32_1 = arith.constant 0 : i32
    return %c0_i32, %c0_i32_0 : i32, i32
  }
  func.func @transform_4(%arg0: i32) -> (i32, i32) {
    %c0_i32 = arith.constant 0 : i32
    %c0_i32_0 = arith.constant 0 : i32
    %c0_i32_1 = arith.constant 0 : i32
    return %c0_i32, %c0_i32_0 : i32, i32
  }
  func.func @transform_5(%arg0: i32) -> (i32, i32) {
    %c0_i32 = arith.constant 0 : i32
    %c0_i32_0 = arith.constant 0 : i32
    return %arg0, %c0_i32 : i32, i32
  }
}

</mosaic_0001>

<bundles_post_ra>
// kernel: tpu_custom_call.1
= control target key start
LH: loop header
LB: loop body
LE: loop exit
PB: predicated region body
PF: predicated region fallthrough
CT: control target
= control target key end

     0   :  { %10 = vsyncpa [#allocation3], 0  ;;  %s1401_s0 = inlined_call_operand.hbm [shape: f32[32,128], index: 0, kind: input, shape index: {}]   ;;  %s1402_s1 = inlined_call_operand.hbm [shape: bf16[128,256], index: 1, kind: input, shape index: {}]   ;;  %s1403_s2 = inlined_call_operand.vmem [shape: f32[1,256], index: 2, kind: input, shape index: {}]   ;;  %s1404_s3 = inlined_call_operand.hbm [shape: bf16[256,128], index: 3, kind: input, shape index: {}]   ;;  %s1405_s4 = inlined_call_operand.vmem [shape: f32[1,128], index: 4, kind: input, shape index: {}]   ;;  %s1406_s5 = inlined_call_operand.hbm [shape: f32[32,128], index: 5, kind: output, shape index: {}]  }
   0x1   :  { %12 = vsyncpa [#allocation3 + $0x1], 0 }
   0x2   :  { %13 = vsyncpa [#allocation6], 0 }
   0x3   :  { %14 = vsyncpa [#allocation4], 0 }
   0x4   :  { %16 = vsyncpa [#allocation4 + $0x1], 0  ;;  %s1147_s18 = smov 0   ;;  %s1149_s19 = smov 0  }
   0x5   :  { %s1151_s20 = smov 0   ;;  %s1153_s21 = smov 0  }
   0x6 LB: > { %s1168_s22 = sadd.s32 4294967295, %s1104_s21   ;;  %s751_s23 = sadd.s32 4294967294, %s1104_s21   ;;  %s1104_s21 = sphi %s1153_s21, %s1426_s21   ;;  %s1100_s20 = sphi %s1151_s20, %s1425_s20   ;;  %s1096_s19 = sphi %s1149_s19, %s1424_s19   ;;  %s1092_s18 = sphi %s1147_s18, %s1423_s18  }
   0x7   : > { %p42_p0 = scmp.ne.s32.totalorder %s1096_s19, %s1092_s18  ;;  %p1407_p1 = scmp.eq.s32.totalorder %s1168_s22, 0 }
   0x8   : > { %p156_p3 = scmp.eq.s32.totalorder %s751_s23, 1  ;;  %p752_p5 = scmp.ge.s32.totalorder %s1104_s21, 1 }
   0x9   : > { %p1177_p4 = por %p1407_p1, %p42_p0  ;;  %p163_p7 = scmp.lt.s32.totalorder %s1104_s21, 3 }
   0xa   : > { %p1182_p6 = por %p156_p3, %p42_p0  ;;  %s1106_s27 = smov [#allocation5]  }
   0xb   : > { %s1410_s24 = scalar_select %p1177_p4, 1, 0 }
   0xc   : > { %s1411_s25 = scalar_select %p1182_p6, 1, 0 }
   0xd   : > { %p1187_p8 = pnand %p752_p5, %p163_p7  ;;  %s175_s28 = sshll.u32 %s1106_s27, 4  ;;  %s1191_s28 = int_to_ptr.vmem [resolvable:$true] %s175_s28 }
   0xe   : > { %s1107_s30 = smov [#allocation7]   ;;  %s948_s9 = scalar_lea.hbm %s1402_s1, 2048 }
   0xf   : > { %p838_p9 = pneg %p1187_p8  ;;  %s191_s6 = sshll.u32 %s1107_s30, 4  ;;  %s1202_s6 = int_to_ptr.vmem [resolvable:$true] %s191_s6 }
  0x10   : > { %p949_p12 = scmp.ne.s32.totalorder %s1402_s1, %s948_s9  ;;  %p955_p5 = scmp.lt.u32.totalorder %s948_s9, %s1402_s1 }
  0x11   : > { %p1198_p11 = pnand %p838_p9, %p1407_p1 }
  0x13   : > { %p950_p13 = pneg %p1198_p11 }
  0x15   : > { %p951_p0 = pnand %p950_p13, %p949_p12 }
  0x17   : > { %p952_p3 = pneg %p951_p0 }
  0x19   : > { %p957_p7 = pnand %p955_p5, %p952_p3 }
  0x1b   : > { %960 = shalt.err (!%p957_p7)
}
  0x1c   : > { %s961_s14 = scalar_lea.vmem %s1191_s28, 2048  ;;  %p969_p2 = scmp.lt.s32.totalorder %s1191_s28, %s1191_s28 }
  0x1d   : > { %p962_p9 = scmp.ne.s32.totalorder %s1191_s28, %s961_s14  ;;  %p970_p12 = scmp.lt.s32.totalorder %s961_s14, %s961_s14 }
  0x1f   : > { %p964_p10 = pnand %p962_p9, %p950_p13  ;;  %p971_p0 = por %p970_p12, %p969_p2 }
  0x21   : > { %p965_p1 = pneg %p964_p10 }
  0x23   : > { %p972_p6 = pnand %p971_p0, %p965_p1 }
  0x25   : > { %975 = shalt.err (!%p972_p6)
}
  0x26   : > { %s1108_s15 = smov 128   ;;  %s1109_s16 = smov 8  }
  0x27   : > { %841 = dma.hbm_to_vmem [thread:$0]  (!%p1198_p11), %s1402_s1, 2048, %s1191_s28, [#allocation6], %s1108_s15, %s1108_s15, %s1109_s16  }
  0x28   : > { %s976_s7 = scalar_lea.hbm %s1404_s3, 2048 }
  0x29   : > { %p977_p1 = scmp.ne.s32.totalorder %s1404_s3, %s976_s7  ;;  %p983_p10 = scmp.lt.u32.totalorder %s976_s7, %s1404_s3 }
  0x2b   : > { %p979_p2 = pnand %p977_p1, %p950_p13 }
  0x2d   : > { %p980_p6 = pneg %p979_p2 }
  0x2f   : > { %p985_p3 = pnand %p983_p10, %p980_p6 }
  0x31   : > { %988 = shalt.err (!%p985_p3)
}
  0x32   : > { %s989_s28 = scalar_lea.vmem %s1202_s6, 2048  ;;  %p997_p12 = scmp.lt.s32.totalorder %s1202_s6, %s1202_s6 }
  0x33   : > { %p990_p5 = scmp.ne.s32.totalorder %s1202_s6, %s989_s28  ;;  %p998_p0 = scmp.lt.s32.totalorder %s989_s28, %s989_s28 }
  0x35   : > { %p992_p7 = pnand %p990_p5, %p950_p13  ;;  %p999_p1 = por %p998_p0, %p997_p12 }
  0x37   : > { %p993_p9 = pneg %p992_p7 }
  0x39   : > { %p1000_p2 = pnand %p999_p1, %p993_p9 }
  0x3b   : > { %1003 = shalt.err (!%p1000_p2)
}
  0x3c   : > { %s1110_s12 = smov 64   ;;  %s1111_s13 = smov 4  }
  0x3d   : > { %844 = dma.hbm_to_vmem [thread:$0]  (!%p1198_p11), %s1404_s3, 2048, %s1202_s6, [#allocation6], %s1110_s12, %s1110_s12, %s1111_s13  }
  0x3e   : > { %s1260_s23 = sadd.s32 1, %s1104_s21   ;;  %s29_s30 = sadd.s32 1, %s1100_s20 }
  0x3f   : > { %s26_s27 = ssub.s32 %s1104_s21, %s1260_s23  ;;  %p36_p6 = scmp.ne.s32.totalorder %s1100_s20, %s1096_s19 }
  0x40   : > { %p27_p13 = scmp.eq.s32.totalorder %s26_s27, 0  ;;  %p37_p10 = scmp.eq.s32.totalorder %s1104_s21, 0 }
  0x41   : > { %p1414_p5 = scmp.eq.s32.totalorder %s1168_s22, 1  ;;  %p855_p9 = scmp.lt.s32.totalorder %s1104_s21, 2 }
  0x42   : > { %s1269_s7 = scalar_select %p27_p13, %s1100_s20, %s29_s30  }
  0x43   : > { %p38_p3 = por %p37_p10, %p36_p6  ;;  %p1273_p7 = por %p1414_p5, %p36_p6 }
  0x44   : > { %s208_s29 = sand.u32 1, %s1100_s20   ;;  %s802_s6 = sshll.u32 %s1104_s21, 8 }
  0x45   : > { %s1415_s8 = scalar_select %p1273_p7, 1, 0 }
  0x46   : > { %s756_s9 = sshll.u32 %s208_s29, 4  ;;  %s1283_s28 = scalar_lea.hbm %s1401_s0, %s802_s6 }
  0x47   : > { %s212_s12 = scalar_lea.vmem [#allocation2], %s756_s9  ;;  %p1287_p11 = pnand %p855_p9, %p38_p3 }
  0x48   : > { %s219_s13 = sshll.u32 %s212_s12, 4  ;;  %s1291_s17 = scalar_lea.sflag [#allocation3], %s208_s29  ;;  %s1285_s13 = int_to_ptr.vmem [resolvable:$true] %s219_s13 }
  0x49   : > { %s1004_s27 = scalar_lea.hbm %s1283_s28, 256  ;;  %p1006_p0 = pneg %p1287_p11 }
  0x4a   : > { %p1005_p12 = scmp.ne.s32.totalorder %s1283_s28, %s1004_s27  ;;  %s1009_s6 = scalar_lea.hbm %s1401_s0, 512 }
  0x4b   : > { %p1010_p13 = scmp.lt.u32.totalorder %s1283_s28, %s1401_s0  ;;  %p1011_p6 = scmp.lt.u32.totalorder %s1009_s6, %s1004_s27 }
  0x4c   : > { %p1007_p1 = pnand %p1006_p0, %p1005_p12  ;;  %p1013_p3 = scmp.lt.u32.totalorder %s1004_s27, %s1283_s28 }
  0x4d   : > { %p1012_p10 = por %p1011_p6, %p1010_p13 }
  0x4e   : > { %p1008_p2 = pneg %p1007_p1 }
  0x4f   : > { %p1014_p5 = por %p1013_p3, %p1012_p10 }
  0x51   : > { %p1015_p9 = pnand %p1014_p5, %p1008_p2 }
  0x53   : > { %1018 = shalt.err (!%p1015_p9)
}
  0x54   : > { %s1019_s29 = scalar_lea.vmem %s1285_s13, 256  ;;  %s1112_s12 = smov [#allocation2]  }
  0x55   : > { %p1020_p12 = scmp.ne.s32.totalorder %s1285_s13, %s1019_s29  ;;  %s1024_s30 = sshll.u32 %s1112_s12, 4  ;;  %s1025_s30 = int_to_ptr.vmem [resolvable:$false] %s1024_s30 }
  0x56   : > { %s1026_s9 = scalar_lea.vmem %s1025_s30, 512  ;;  %p1027_p4 = scmp.lt.s32.totalorder %s1285_s13, %s1025_s30 }
  0x57   : > { %p1022_p1 = pnand %p1020_p12, %p1006_p0  ;;  %p1028_p13 = scmp.lt.s32.totalorder %s1026_s9, %s1019_s29 }
  0x59   : > { %p1023_p7 = pneg %p1022_p1  ;;  %p1029_p6 = por %p1028_p13, %p1027_p4 }
  0x5b   : > { %p1030_p10 = pnand %p1029_p6, %p1023_p7 }
  0x5d   : > { %1033 = shalt.err (!%p1030_p10)
}
  0x5e   : > { %848 = dma.hbm_to_vmem [thread:$0]  (!%p1287_p11), %s1283_s28, 256, %s1285_s13, %s1291_s17, %s1108_s15, %s1108_s15, %s1109_s16  }
  0x5f   : > { %231 = sbr.rel (%p1187_p8) target bundleno = 616 (0x268), region = 40  ;;  %s1325_s27 = sand.u32 (!%p1187_p8), 1, %s1096_s19  }
  0x60   : > { %s760_s6 = sshll.u32 (!%p1187_p8), %s1325_s27, 4  ;;  %s234_s10 = scalar_lea.sflag (!%p1187_p8), [#allocation3], %s1325_s27 }
  0x61   : > { %s1331_s14 = scalar_lea.vmem (!%p1187_p8), [#allocation2], %s760_s6  ;;  %p1417_p4 = scmp.ne.s32.totalorder (!%p1187_p8), %s1410_s24, 0 }
  0x66   : > { %1079 = dma.done.wait (%p1417_p4), %s234_s10, 256  }
  0x67   : > { %1081 = vsyncadd (%p1417_p4), %s234_s10, 4294967040  ;;  %p1418_p7 = scmp.eq.s32.totalorder %s1168_s22, 0 }
  0x69   : > { %1083 = dma.done.wait (%p1418_p7), [#allocation6], 4096   ;;  %p1419_p8 = pmov %p1418_p7 }
  0x6a   : > { %v1113_v0 = vmov 0   ;;  %v900_v1 = vld [vmem:[#allocation5 + $0x4] ss:$8 sps:$4 sm:$0xff]   ;;  %v902_v2 = vld [vmem:[#allocation5] ss:$8 sps:$4 sm:$0xff]   ;;  %v928_v24 = vld [vmem:[#allocation7 + $0x50] sm:$0xff]   ;;  %v296_v36 = vlaneseq }
  0x6b   : > { %1085 = vsyncadd (%p1419_p8), [#allocation6], 4294963200  ;;  %418 = vmatprep.mubr.bf16.mxu0 %v1113_v0  ;;  %386 = vmatprep.subr.bf16.mxu0 %v900_v1  ;;  %v903_v3 = vld [vmem:[#allocation5 + $0x14] ss:$8 sps:$4 sm:$0xff]   ;;  %v905_v4 = vld [vmem:[#allocation5 + $0x10] ss:$8 sps:$4 sm:$0xff]  }
  0x6c   : > { %387 = vmatpush1.bf16.msra.mxu0 %v902_v2  ;;  %v906_v5 = vld [vmem:[#allocation5 + $0x24] ss:$8 sps:$4 sm:$0xff]   ;;  %v908_v6 = vld [vmem:[#allocation5 + $0x20] ss:$8 sps:$4 sm:$0xff]   ;;  %v909_v7 = vld [vmem:[#allocation5 + $0x34] ss:$8 sps:$4 sm:$0xff]  }
  0x6d   : > { %388 = vmatprep.subr.bf16.mxu0 %v903_v3  ;;  %v911_v8 = vld [vmem:[#allocation5 + $0x30] ss:$8 sps:$4 sm:$0xff]   ;;  %v912_v9 = vld [vmem:[#allocation5 + $0x44] ss:$8 sps:$4 sm:$0xff]   ;;  %v914_v10 = vld [vmem:[#allocation5 + $0x40] ss:$8 sps:$4 sm:$0xff]  }
  0x6e   : > { %v915_v11 = vld [vmem:[#allocation5 + $0x54] ss:$8 sps:$4 sm:$0xff]   ;;  %v917_v12 = vld [vmem:[#allocation5 + $0x50] ss:$8 sps:$4 sm:$0xff]   ;;  %v918_v13 = vld [vmem:[#allocation5 + $0x64] ss:$8 sps:$4 sm:$0xff]  }
  0x6f   : > { %v920_v14 = vld [vmem:[#allocation5 + $0x60] ss:$8 sps:$4 sm:$0xff]   ;;  %v921_v15 = vld [vmem:[#allocation5 + $0x74] ss:$8 sps:$4 sm:$0xff]   ;;  %v923_v16 = vld [vmem:[#allocation5 + $0x70] ss:$8 sps:$4 sm:$0xff]  }
  0x70   : > { %389 = vmatpush1.bf16.msra.mxu0 %v905_v4  ;;  %v275_v17 = vld [vmem:[%s1331_s14] sm:$0xff]  ;;  %v276_v18 = vld [vmem:[%s1331_s14 + $0x8] sm:$0xff]  ;;  %v297_v37 = vshrl.u32 %v296_v36, 7  ;;  %s271_s28 = scalar_lea.vmem [#allocation8], %s760_s6  ;;  %s803_s17 = sshll.u32 %s1168_s22, 8 }
  0x71   : > { %390 = vmatprep.subr.bf16.mxu0 %v906_v5  ;;  %v277_v19 = vpack.c.bf16 %v276_v18, %v275_v17  ;;  %v924_v20 = vld [vmem:[#allocation7 + $0x40] sm:$0xff]   ;;  %v926_v22 = vld [vmem:[#allocation7 + $0x48] sm:$0xff]   ;;  %v929_v25 = vld [vmem:[#allocation7 + $0x10] sm:$0xff]   ;;  %s659_s13 = sshll.u32 %s271_s28, 4  ;;  %s1357_s12 = scalar_lea.hbm %s1406_s5, %s803_s17  ;;  %s1352_s13 = int_to_ptr.vmem [resolvable:$true] %s659_s13 }
  0x72   : > { %v925_v21 = vld [vmem:[#allocation7] sm:$0xff]   ;;  %804 = vmatprep.subr.bf16.mxu1 %v924_v20  ;;  %v927_v23 = vld [vmem:[#allocation7 + $0x8] sm:$0xff]   ;;  %v930_v26 = vld [vmem:[#allocation7 + $0x58] sm:$0xff]   ;;  %v298_v38 = vsub.s32 0, %v297_v37  ;;  %v302_v40 = vsub.s32 1, %v297_v37  ;;  %s646_s30 = scalar_lea.sflag [#allocation4], %s1325_s27 }
  0x73   : > { %805 = vmatpush3.bf16.msra.mxu1 %v925_v21  ;;  %v931_v27 = vld [vmem:[#allocation7 + $0x18] sm:$0xff]   ;;  %v932_v28 = vld [vmem:[#allocation7 + $0x60] sm:$0xff]   ;;  %v934_v30 = vld [vmem:[#allocation7 + $0x68] sm:$0xff]   ;;  %s1034_s9 = scalar_lea.vmem %s1352_s13, 256  ;;  %p1420_p0 = scmp.ne.s32.totalorder %s1415_s8, 0 }
  0x74   : > { %391 = vmatpush1.bf16.msra.mxu0 %v908_v6  ;;  %806 = vmatprep.subr.bf16.mxu1 %v926_v22  ;;  %v933_v29 = vld [vmem:[#allocation7 + $0x20] sm:$0xff]   ;;  %v935_v31 = vld [vmem:[#allocation7 + $0x28] sm:$0xff]   ;;  %v936_v32 = vld [vmem:[#allocation7 + $0x70] sm:$0xff]   ;;  %p1035_p11 = scmp.ne.s32.totalorder %s1352_s13, %s1034_s9  ;;  %s1114_s22 = smov [#allocation8]  }
  0x75   : > { %392 = vmatprep.subr.bf16.mxu0 %v909_v7  ;;  %v937_v33 = vld [vmem:[#allocation7 + $0x30] sm:$0xff]   ;;  %v938_v34 = vld [vmem:[#allocation7 + $0x78] sm:$0xff]   ;;  %v294_v39 = vld [vmem:[%s1403_s2] sm:$0x3]  ;;  %s1038_s6 = sshll.u32 %s1114_s22, 4  ;;  %s1039_s6 = int_to_ptr.vmem [resolvable:$false] %s1038_s6 }
  0x76   : > { %v939_v35 = vld [vmem:[#allocation7 + $0x38] sm:$0xff]   ;;  %v299_v41 = vrot.slane %v294_v39, %v298_v38  ;;  %v303_v42 = vrot.slane %v294_v39, %v302_v40  ;;  %p1036_p2 = pnand %p1035_p11, %p1420_p0  ;;  %s1040_s10 = scalar_lea.vmem %s1039_s6, 512 }
  0x77   : > { %807 = vmatpush3.bf16.msra.mxu1 %v927_v23  ;;  %p1041_p5 = scmp.lt.s32.totalorder %s1352_s13, %s1039_s6  ;;  %p1042_p9 = scmp.lt.s32.totalorder %s1040_s10, %s1034_s9 }
  0x78   : > { %393 = vmatpush1.bf16.msra.mxu0 %v911_v8  ;;  %808 = vmatprep.subr.bf16.mxu1 %v928_v24  ;;  %p1037_p3 = pneg %p1036_p2 }
  0x79   : > { %394 = vmatprep.subr.bf16.mxu0 %v912_v9  ;;  %p1043_p12 = por %p1042_p9, %p1041_p5 }
  0x7b   : > { %809 = vmatpush3.bf16.msra.mxu1 %v929_v25  ;;  %p1044_p1 = pnand %p1043_p12, %p1037_p3 }
  0x7c   : > { %395 = vmatpush1.bf16.msra.mxu0 %v914_v10  ;;  %810 = vmatprep.subr.bf16.mxu1 %v930_v26  ;;  %v780_v26 = vld [vmem:[%s1405_s4] ss:$0 sm:$0xff] }
  0x7d   : > { %396 = vmatprep.subr.bf16.mxu0 %v915_v11 }
  0x7f   : > { %811 = vmatpush3.bf16.msra.mxu1 %v931_v27 }
  0x80   : > { %397 = vmatpush1.bf16.msra.mxu0 %v917_v12  ;;  %812 = vmatprep.subr.bf16.mxu1 %v932_v28 }
  0x81   : > { %398 = vmatprep.subr.bf16.mxu0 %v918_v13 }
  0x83   : > { %813 = vmatpush3.bf16.msra.mxu1 %v933_v29 }
  0x84   : > { %399 = vmatpush1.bf16.msra.mxu0 %v920_v14  ;;  %814 = vmatprep.subr.bf16.mxu1 %v934_v30 }
  0x85   : > { %400 = vmatprep.subr.bf16.mxu0 %v921_v15 }
  0x87   : > { %815 = vmatpush3.bf16.msra.mxu1 %v935_v31 }
  0x88   : > { %401 = vmatpush1.bf16.msra.mxu0 %v923_v16  ;;  %816 = vmatprep.subr.bf16.mxu1 %v936_v32 }
  0x8b   : > { %419 = vmatmul.mubr.bf16.vlgmr.msra.gmra.mrb[0].mxu0 %v277_v19  ;;  %817 = vmatpush3.bf16.msra.mxu1 %v937_v33 }
  0x8c   : > { %818 = vmatprep.subr.bf16.mxu1 %v938_v34 }
  0x8f   : > { %819 = vmatpush3.bf16.msra.mxu1 %v939_v35 }
 0x15e   : > { %v420_v43 = vpop.f32.mrb[0].mxu0 }
 0x15f   : > { %v421_v44 = vadd.f32 %v420_v43, %v299_v41  ;;  %v422_v45 = vpop.f32.mrb[1].mxu0 }
 0x160   : > { %v423_v46 = vadd.f32 %v422_v45, %v303_v42  ;;  %v424_v47 = vpop.f32.mrb[2].mxu0 }
 0x161   : > { %v429_v48 = vmul.f32 %v421_v44, %v421_v44  ;;  %v425_v49 = vadd.f32 %v424_v47, %v299_v41  ;;  %v426_v50 = vpop.f32.mrb[3].mxu0  ;;  %v437_v57 = vmul.f32 0.7978846, %v421_v44  ;;  %v433_v13 = vmul.f32 0.5, %v421_v44 }
 0x162   : > { %v430_v51 = vmul.f32 %v423_v46, %v423_v46  ;;  %v427_v52 = vadd.f32 %v426_v50, %v303_v42  ;;  %v438_v60 = vmul.f32 0.7978846, %v423_v46  ;;  %v434_v16 = vmul.f32 0.5, %v423_v46 }
 0x163   : > { %v441_v53 = vmul.f32 0.044715, %v429_v48  ;;  %v431_v54 = vmul.f32 %v425_v49, %v425_v49  ;;  %v439_v0 = vmul.f32 0.7978846, %v425_v49  ;;  %v435_v14 = vmul.f32 0.5, %v425_v49 }
 0x164   : > { %v442_v55 = vmul.f32 0.044715, %v430_v51  ;;  %v432_v56 = vmul.f32 %v427_v52, %v427_v52  ;;  %v440_v3 = vmul.f32 0.7978846, %v427_v52  ;;  %v436_v17 = vmul.f32 0.5, %v427_v52 }
 0x165   : > { %v445_v58 = vadd.f32 1.0, %v441_v53  ;;  %v443_v59 = vmul.f32 0.044715, %v431_v54 }
 0x166   : > { %v446_v61 = vadd.f32 1.0, %v442_v55  ;;  %v444_v62 = vmul.f32 0.044715, %v432_v56 }
 0x167   : > { %v449_v63 = vmul.f32 %v445_v58, %v437_v57  ;;  %v447_v1 = vadd.f32 1.0, %v443_v59 }
 0x168   : > { %v450_v2 = vmul.f32 %v446_v61, %v438_v60  ;;  %v448_v4 = vadd.f32 1.0, %v444_v62 }
 0x169   : > { %940 = vtanh.f32 %v449_v63  ;;  %v451_v5 = vmul.f32 %v447_v1, %v439_v0 }
 0x16a   : > { %v452_v6 = vmul.f32 %v448_v4, %v440_v3  ;;  %942 = vtanh.f32 %v450_v2 }
 0x16b   : > { %944 = vtanh.f32 %v451_v5 }
 0x16c   : > { %946 = vtanh.f32 %v452_v6 }
 0x173   : > { %v941_v7 = vpop.eup %940 }
 0x174   : > { %v943_v8 = vpop.eup %942  ;;  %v457_v9 = vadd.f32 1.0, %v941_v7 }
 0x175   : > { %v945_v10 = vpop.eup %944  ;;  %v458_v11 = vadd.f32 1.0, %v943_v8 }
 0x176   : > { %v947_v12 = vpop.eup %946  ;;  %v459_v15 = vadd.f32 1.0, %v945_v10  ;;  %v461_v19 = vmul.f32 %v457_v9, %v433_v13 }
 0x177   : > { %v460_v18 = vadd.f32 1.0, %v947_v12  ;;  %v462_v21 = vmul.f32 %v458_v11, %v434_v16 }
 0x178   : > { %v463_v20 = vmul.f32 %v459_v15, %v435_v14 }
 0x179   : > { %v464_v22 = vmul.f32 %v460_v18, %v436_v17 }
 0x17a   : > { %v465_v23 = vpack.c.bf16 %v463_v20, %v461_v19 }
 0x17b   : > { %v466_v24 = vpack.c.bf16 %v464_v22, %v462_v21 }
 0x17d   : > { %634 = vmatprep.mubr.bf16.mxu1 %v466_v24 }
 0x17e   : > { %635 = vmatmul.mubr.bf16.vlgmr.msra.gmra.mrb[0].mxu1 %v465_v23 }
 0x251   : > { %v820_v25 = vpop.f32.mrb[0].mxu1 }
 0x252   : > { %v821_v27 = vpop.f32.mrb[1].mxu1 }
 0x253   : > { %v822_v28 = vadd.f32 %v821_v27, %v820_v25  ;;  %v823_v29 = vpop.f32.mrb[2].mxu1 }
 0x254   : > { %v824_v30 = vpop.f32.mrb[3].mxu1 }
 0x255   : > { %v637_v31 = vadd.f32 %v822_v28, %v780_v26  ;;  %v825_v32 = vadd.f32 %v824_v30, %v823_v29 }
 0x257   : > { %643 = vst [vmem:[%s271_s28] sm:$0xff] %v637_v31  ;;  %v640_v33 = vadd.f32 %v825_v32, %v780_v26 }
 0x259   : > { %644 = vst [vmem:[%s271_s28 + $0x8] sm:$0xff] %v640_v33 }
 0x25a   : > { %1047 = shalt.err (!%p1044_p1)
}
 0x25b   : > { %s1048_s14 = scalar_lea.hbm %s1357_s12, 256  ;;  %s1052_s15 = scalar_lea.hbm %s1406_s5, 512 }
 0x25c   : > { %p1049_p13 = scmp.ne.s32.totalorder %s1357_s12, %s1048_s14  ;;  %p1053_p4 = scmp.lt.u32.totalorder %s1357_s12, %s1406_s5 }
 0x25d   : > { %p1054_p7 = scmp.lt.u32.totalorder %s1052_s15, %s1048_s14  ;;  %p1056_p11 = scmp.lt.u32.totalorder %s1048_s14, %s1357_s12 }
 0x25e   : > { %p1050_p6 = pnand %p1049_p13, %p1420_p0 }
 0x25f   : > { %p1055_p8 = por %p1054_p7, %p1053_p4 }
 0x260   : > { %p1051_p10 = pneg %p1050_p6 }
 0x261   : > { %p1057_p2 = por %p1056_p11, %p1055_p8 }
 0x263   : > { %p1058_p3 = pnand %p1057_p2, %p1051_p10 }
 0x265   : > { %1061 = shalt.err (!%p1058_p3)
}
 0x266   : > { %s1115_s17 = smov 128   ;;  %s1116_s11 = smov 8  }
 0x267   : > { %836 = dma.vmem_to_hbm [thread:$0]  (%p1420_p0), %s1352_s13, 256, %s1357_s12, %s646_s30, %s1115_s17, %s1115_s17, %s1116_s11  }
 0x268 PF: > { %s674_s29 = sand.u32 1, %s1092_s18   ;;  %p1421_p5 = scmp.ne.s32.totalorder %s1411_s25, 0 }
 0x269   : > { %p1422_p9 = scmp.ge.s32.totalorder %s1104_s21, 2  ;;  %s675_s9 = scalar_lea.sflag [#allocation4], %s674_s29 }
 0x26b   : > { %p850_p12 = pnand %p1422_p9, %p1421_p5 }
 0x26d   : > { %1087 = dma.done.wait (!%p850_p12), %s675_s9, 256  }
 0x26e   : > { %1089 = vsyncadd (!%p850_p12), %s675_s9, 4294967040  ;;  %p19_p1 = scmp.ge.s32.totalorder %s1260_s23, 4   ;;  %s1423_s18 = smov %s1096_s19 }
 0x26f   : > { %s1424_s19 = smov %s1100_s20  ;;  %s1425_s20 = smov %s1269_s7 }
 0x270   : > { %s1426_s21 = smov %s1260_s23  ;;  %21 = sbr.rel (!%p19_p1) target bundleno = 6 (0x6), region = 93 }
 0x277   :  { %680 = vsyncpa [#allocation3], 1 }
 0x278   :  { %682 = vsyncpa [#allocation3 + $0x1], 1 }
 0x279   :  { %683 = vsyncpa [#allocation6], 1 }
 0x27a   :  { %684 = vsyncpa [#allocation4], 1 }
 0x27b   :  { %686 = vsyncpa [#allocation4 + $0x1], 1 }

</bundles_post_ra>
